<compile_context>
chip_gen: v6e
topology: v6e:2x2x1
jax: 0.10.0
libtpu: 0.0.40
codegen_flags: <defaults>
</compile_context>

<pallas_src>
import functools

import jax
import jax.numpy as jnp
from jax.experimental import pallas as pl
from jax.experimental.pallas import tpu as pltpu


def _round_up(x, m):
    return (x + m - 1) // m * m


def _vmem_capacity_bytes():
    """Generation-aware VMEM size; conservative (v7x, 64 MiB) if the query fails."""
    try:
        info = pltpu.get_tpu_info()
        cap = getattr(info, "vmem_capacity_bytes", None)
        if cap:
            return int(cap)
    except Exception:
        pass
    return 64 * 1024 * 1024


# ---------------------------------------------------------------------------
# In-kernel helpers (all VPU/XLU; no tiny MXU matmuls).
# ---------------------------------------------------------------------------
def _fc_gates(sq, w1t_ref, b1_ref, w2_ref, b2_ref):
    """g_c = sigmoid(W2 relu(W1 sq + b1) + b2), sq: (C, 1) -> (C, 1)."""
    # fc1: W1 stored transposed as (C, Cr): elementwise mul + cross-sublane reduce.
    h = jnp.maximum(
        jnp.sum(w1t_ref[...] * sq, axis=0, keepdims=True) + b1_ref[...], 0.0)   # (1, Cr)
    # fc2: W2 as (C, Cr): elementwise mul + lane reduce.
    z = jnp.sum(w2_ref[...] * h, axis=1, keepdims=True) + b2_ref[...]           # (C, 1)
    return jax.nn.sigmoid(z)


def _scse_combine(x, g_c, wc_ref, bc_scalar):
    """out = max(x * g_c, x * sigmoid(conv1x1(x)));  x: (C, T), g_c: (C, 1)."""
    cse = x * g_c                                                                # (C, T)
    # sSE 1x1 conv (C -> 1): VPU mul + cross-sublane reduce; bc comes from SMEM.
    s = jnp.sum(x * wc_ref[...], axis=0, keepdims=True) + bc_scalar             # (1, T)
    return jnp.maximum(cse, x * jax.nn.sigmoid(s))


# ---------------------------------------------------------------------------
# Kernels
# ---------------------------------------------------------------------------
def _fused_kernel(x_ref, w1t_ref, b1_ref, w2_ref, b2_ref, wc_ref, bc_ref,
                  o_ref, *, inv_hw):
    """Single pass per batch: whole (C, HW) slab resident -> read once, write once."""
    x = x_ref[0].astype(jnp.float32)                       # (C, HW)
    sq = jnp.sum(x, axis=1, keepdims=True) * inv_hw        # (C, 1)  channel mean
    g_c = _fc_gates(sq, w1t_ref, b1_ref, w2_ref, b2_ref)   # (C, 1)
    o_ref[0] = _scse_combine(x, g_c, wc_ref, bc_ref[0]).astype(o_ref.dtype)


def _gate_kernel(x_ref, w1t_ref, b1_ref, w2_ref, b2_ref, g_ref, acc_ref, *,
                 inv_hw, hw, lane_tile, needs_mask):
    """Pass 1 (fallback): per-channel mean over HW tiles, then the tiny FCs."""
    t = pl.program_id(1)

    @pl.when(t == 0)
    def _():
        acc_ref[...] = jnp.zeros_like(acc_ref)

    x = x_ref[0].astype(jnp.float32)                       # (C, T)
    if needs_mask:
        # Boundary-block reads are undefined: zero the ragged tail before summing.
        lane = jax.lax.broadcasted_iota(jnp.int32, x.shape, 1) + t * lane_tile
        x = jnp.where(lane < hw, x, 0.0)
    acc_ref[...] += jnp.sum(x, axis=1, keepdims=True)      # (C, 1)  lane (XLU) reduce

    @pl.when(t == pl.num_programs(1) - 1)
    def _():
        g_ref[0] = _fc_gates(acc_ref[...] * inv_hw, w1t_ref, b1_ref, w2_ref, b2_ref)


def _apply_kernel(x_ref, gc_ref, wc_ref, bc_ref, o_ref):
    """Pass 2 (fallback): out = max(x * g_c, x * sigmoid(conv1x1(x))).

    No mask needed: garbage input lanes of the boundary block only affect
    output lanes that are masked on writeback (no cross-lane reduction here
    feeds stored data)."""
    x = x_ref[0].astype(jnp.float32)                       # (C, T)
    o_ref[0] = _scse_combine(x, gc_ref[0], wc_ref, bc_ref[0]).astype(o_ref.dtype)


# ---------------------------------------------------------------------------
# Wrapper
# ---------------------------------------------------------------------------
def channel_spatial_se(x_nchw, w1, b1, w2, b2, wc, bc, *,
                       force_two_pass=False,
                       lane_tile_gate=None, lane_tile_apply=None):
    """scSE forward.

    x_nchw: (B, C, H, W)
    w1: fc1.weight (Cr, C)    b1: fc1.bias (Cr,)
    w2: fc2.weight (C, Cr)    b2: fc2.bias (C,)
    wc: conv.weight flattened to (C,) (from (1, C, 1, 1))    bc: conv.bias (1,)
    """
    B, C, H, W = x_nchw.shape
    Cr = w1.shape[0]
    HW = H * W
    out_dtype = x_nchw.dtype
    itemsize = jnp.dtype(out_dtype).itemsize

    # Stream x in its native dtype; reshape is metadata-only (contiguous), no pad.
    x = x_nchw.reshape(B, C, HW)

    # Kernel-friendly f32 parameter layouts (tiny, done once host-side).
    w1t = jnp.asarray(w1, jnp.float32).T.reshape(C, Cr)      # (C, Cr)
    b1r = jnp.asarray(b1, jnp.float32).reshape(1, Cr)        # (1, Cr)
    w2m = jnp.asarray(w2, jnp.float32).reshape(C, Cr)        # (C, Cr)
    b2c = jnp.asarray(b2, jnp.float32).reshape(C, 1)         # (C, 1)
    wcc = jnp.asarray(wc, jnp.float32).reshape(C, 1)         # (C, 1)
    bcs = jnp.asarray(bc, jnp.float32).reshape(1)            # scalar -> SMEM

    # Generation-aware VMEM budgeting.
    cap = _vmem_capacity_bytes()
    if cap >= 96 * 1024 * 1024:            # v5e / v6e: 128 MiB physical VMEM
        vmem_limit = 64 * 1024 * 1024
        fused_slab_max = 12 * 1024 * 1024  # 2x in + 2x out double-buffered <= ~48 MiB
        gate_tile_bytes = 8 * 1024 * 1024  # gate pass has no large output slab
        apply_tile_bytes = 4 * 1024 * 1024
    else:                                  # v7x: 64 MiB VMEM per TensorCore
        vmem_limit = 48 * 1024 * 1024
        fused_slab_max = 6 * 1024 * 1024
        gate_tile_bytes = 4 * 1024 * 1024
        apply_tile_bytes = 2 * 1024 * 1024

    inv_hw = 1.0 / HW
    slab_bytes = C * HW * itemsize

    if slab_bytes <= fused_slab_max and not force_two_pass:
        # ---- fused path: one read + one write of x, grid (B,) "parallel" ----
        out = pl.pallas_call(
            functools.partial(_fused_kernel, inv_hw=inv_hw),
            out_shape=jax.ShapeDtypeStruct((B, C, HW), out_dtype),
            grid_spec=pltpu.PrefetchScalarGridSpec(
                num_scalar_prefetch=0,
                grid=(B,),
                in_specs=[
                    pl.BlockSpec((1, C, HW), lambda b: (b, 0, 0)),
                    pl.BlockSpec((C, Cr), lambda b: (0, 0)),
                    pl.BlockSpec((1, Cr), lambda b: (0, 0)),
                    pl.BlockSpec((C, Cr), lambda b: (0, 0)),
                    pl.BlockSpec((C, 1), lambda b: (0, 0)),
                    pl.BlockSpec((C, 1), lambda b: (0, 0)),
                    pl.BlockSpec(memory_space=pltpu.MemorySpace.SMEM),
                ],
                out_specs=pl.BlockSpec((1, C, HW), lambda b: (b, 0, 0)),
            ),
            compiler_params=pltpu.CompilerParams(
                dimension_semantics=("parallel",),
                vmem_limit_bytes=vmem_limit),
        )(x, w1t, b1r, w2m, b2c, wcc, bcs)
        return out.reshape(B, C, H, W)

    # ---- two-pass tiled fallback (large images) ----
    def pick_tile(target_bytes, override):
        if override is not None:
            return min(_round_up(override, 128), _round_up(HW, 128))
        t = max(128, (target_bytes // (itemsize * C)) // 128 * 128)
        return min(t, _round_up(HW, 128))

    tg = pick_tile(gate_tile_bytes, lane_tile_gate)
    ta = pick_tile(apply_tile_bytes, lane_tile_apply)
    ntg = pl.cdiv(HW, tg)
    nta = pl.cdiv(HW, ta)

    # Pass 1: channel-SE gates g_c, shape (B, C, 1), t axis sequential ("arbitrary").
    g_c = pl.pallas_call(
        functools.partial(_gate_kernel, inv_hw=inv_hw, hw=HW, lane_tile=tg,
                          needs_mask=(HW % tg != 0)),
        out_shape=jax.ShapeDtypeStruct((B, C, 1), jnp.float32),
        grid_spec=pltpu.PrefetchScalarGridSpec(
            num_scalar_prefetch=0,
            grid=(B, ntg),
            in_specs=[
                pl.BlockSpec((1, C, tg), lambda b, t: (b, 0, t)),
                pl.BlockSpec((C, Cr), lambda b, t: (0, 0)),
                pl.BlockSpec((1, Cr), lambda b, t: (0, 0)),
                pl.BlockSpec((C, Cr), lambda b, t: (0, 0)),
                pl.BlockSpec((C, 1), lambda b, t: (0, 0)),
            ],
            out_specs=pl.BlockSpec((1, C, 1), lambda b, t: (b, 0, 0)),
            scratch_shapes=[pltpu.VMEM((C, 1), jnp.float32)],
        ),
        compiler_params=pltpu.CompilerParams(
            dimension_semantics=("parallel", "arbitrary"),
            vmem_limit_bytes=vmem_limit),
    )(x, w1t, b1r, w2m, b2c)

    # Pass 2: apply cSE / sSE gating, out = max(cse, sse); both axes "parallel".
    out = pl.pallas_call(
        _apply_kernel,
        out_shape=jax.ShapeDtypeStruct((B, C, HW), out_dtype),
        grid_spec=pltpu.PrefetchScalarGridSpec(
            num_scalar_prefetch=0,
            grid=(B, nta),
            in_specs=[
                pl.BlockSpec((1, C, ta), lambda b, t: (b, 0, t)),
                pl.BlockSpec((1, C, 1), lambda b, t: (b, 0, 0)),
                pl.BlockSpec((C, 1), lambda b, t: (0, 0)),
                pl.BlockSpec(memory_space=pltpu.MemorySpace.SMEM),
            ],
            out_specs=pl.BlockSpec((1, C, ta), lambda b, t: (b, 0, t)),
        ),
        compiler_params=pltpu.CompilerParams(
            dimension_semantics=("parallel", "parallel"),
            vmem_limit_bytes=vmem_limit),
    )(x, g_c, wcc, bcs)

    return out.reshape(B, C, H, W)


# ---------------------------------------------------------------------------
# Pure-JAX reference
# ---------------------------------------------------------------------------
def _reference(x, w1, b1, w2, b2, wc, bc):
    B, C, H, W = x.shape
    sq = x.reshape(B, C, -1).mean(axis=2)                    # (B, C)
    h = jax.nn.relu(sq @ w1.T + b1.reshape(1, -1))           # (B, Cr)
    g_c = jax.nn.sigmoid(h @ w2.T + b2.reshape(1, -1))       # (B, C)
    cse = x * g_c[:, :, None, None]
    s = jnp.einsum("bchw,c->bhw", x, wc.reshape(-1)) + bc.reshape(())
    sse = x * jax.nn.sigmoid(s)[:, None, :, :]
    return jnp.maximum(cse, sse)


if __name__ == "__main__":
    B, C, H, W = 2, 4, 16, 16
    reduction_ratio = 2
    Cr = C // reduction_ratio

    key = jax.random.PRNGKey(0)
    kx, k1, k2, k3, k4, k5, k6 = jax.random.split(key, 7)

    x = jax.random.normal(kx, (B, C, H, W), dtype=jnp.float32)

    # Deterministic synthetic parameters (shapes follow nn.Linear / nn.Conv2d).
    w1 = jax.random.normal(k1, (Cr, C), dtype=jnp.float32) * 0.5   # fc1.weight
    b1 = jax.random.normal(k2, (Cr,), dtype=jnp.float32) * 0.1     # fc1.bias
    w2 = jax.random.normal(k3, (C, Cr), dtype=jnp.float32) * 0.5   # fc2.weight
    b2 = jax.random.normal(k4, (C,), dtype=jnp.float32) * 0.1      # fc2.bias
    wc = jax.random.normal(k5, (C,), dtype=jnp.float32) * 0.5      # conv.weight (1,C,1,1)
    bc = jax.random.normal(k6, (1,), dtype=jnp.float32) * 0.1      # conv.bias

    # Default (fused, read-once/write-once) path.
    out = jax.block_until_ready(channel_spatial_se(x, w1, b1, w2, b2, wc, bc))
    ref = _reference(x, w1, b1, w2, b2, wc, bc)
    assert out.shape == (B, C, H, W)
    assert jnp.allclose(out, ref, atol=1e-5, rtol=1e-5), "fused path mismatch"

    # Two-pass tiled fallback, forced with small tiles and a ragged HW tail
    # (exercises the in-kernel boundary masking instead of host-side padding).
    H2, W2 = 13, 20                                          # HW = 260 -> 3 tiles of 128
    x2 = jax.random.normal(kx, (B, C, H2, W2), dtype=jnp.float32)
    out2 = jax.block_until_ready(
        channel_spatial_se(x2, w1, b1, w2, b2, wc, bc,
                           force_two_pass=True,
                           lane_tile_gate=128, lane_tile_apply=128))
    ref2 = _reference(x2, w1, b1, w2, b2, wc, bc)
    assert out2.shape == (B, C, H2, W2)
    assert jnp.allclose(out2, ref2, atol=1e-5, rtol=1e-5), "two-pass path mismatch"

    print("KERNEL_OK")
</pallas_src>

<mosaic_0001>
module attributes {stable_mosaic.version = 11 : i64} {
  func.func @_fused_kernel(%arg0: i32, %arg1: memref<1x4x256xf32, #tpu.memory_space<vmem>>, %arg2: memref<4x2xf32, #tpu.memory_space<vmem>>, %arg3: memref<1x2xf32, #tpu.memory_space<vmem>>, %arg4: memref<4x2xf32, #tpu.memory_space<vmem>>, %arg5: memref<4x1xf32, #tpu.memory_space<vmem>>, %arg6: memref<4x1xf32, #tpu.memory_space<vmem>>, %arg7: memref<1xf32, #tpu.memory_space<smem>>, %arg8: memref<1x4x256xf32, #tpu.memory_space<vmem>>) attributes {dimension_semantics = [#tpu.dimension_semantics<parallel>], iteration_bounds = array<i64: 2>, scalar_prefetch = 0 : i64, scratch_operands = 0 : i64, tpu.core_type = #tpu.core_type<tc>, window_params = [{transform_indices = @transform_0, window_bounds = array<i64: 1, 4, 256>}, {pipeline_mode = #tpu.pipeline_mode<synchronous>, transform_indices = @transform_1, window_bounds = array<i64: 4, 2>}, {pipeline_mode = #tpu.pipeline_mode<synchronous>, transform_indices = @transform_2, window_bounds = array<i64: 1, 2>}, {pipeline_mode = #tpu.pipeline_mode<synchronous>, transform_indices = @transform_3, window_bounds = array<i64: 4, 2>}, {pipeline_mode = #tpu.pipeline_mode<synchronous>, transform_indices = @transform_4, window_bounds = array<i64: 4, 1>}, {pipeline_mode = #tpu.pipeline_mode<synchronous>, transform_indices = @transform_5, window_bounds = array<i64: 4, 1>}, {transform_indices = @transform_6, window_bounds = array<i64: 1>}, {transform_indices = @transform_7, window_bounds = array<i64: 1, 4, 256>}]} {
    %c0 = arith.constant 0 : index
    %c0_0 = arith.constant 0 : index
    %c0_1 = arith.constant 0 : index
    %0 = vector.load %arg1[%c0, %c0_0, %c0_1] : memref<1x4x256xf32, #tpu.memory_space<vmem>>, vector<1x4x256xf32>
    %1 = vector.shape_cast %0 : vector<1x4x256xf32> to vector<4x256xf32>
    %cst = arith.constant dense<0.000000e+00> : vector<4xf32>
    %2 = vector.multi_reduction <add>, %1, %cst [1] : vector<4x256xf32> to vector<4xf32>
    %3 = vector.shape_cast %2 : vector<4xf32> to vector<4x1xf32>
    %cst_2 = arith.constant 3.906250e-03 : f32
    %4 = vector.broadcast %cst_2 : f32 to vector<4x1xf32>
    %5 = arith.mulf %3, %4 : vector<4x1xf32>
    %c0_3 = arith.constant 0 : index
    %c0_4 = arith.constant 0 : index
    %6 = vector.load %arg2[%c0_3, %c0_4] : memref<4x2xf32, #tpu.memory_space<vmem>>, vector<4x2xf32>
    %7 = vector.broadcast %5 : vector<4x1xf32> to vector<4x2xf32>
    %8 = arith.mulf %6, %7 : vector<4x2xf32>
    %cst_5 = arith.constant dense<0.000000e+00> : vector<2xf32>
    %9 = vector.multi_reduction <add>, %8, %cst_5 [0] : vector<4x2xf32> to vector<2xf32>
    %10 = vector.shape_cast %9 : vector<2xf32> to vector<1x2xf32>
    %c0_6 = arith.constant 0 : index
    %c0_7 = arith.constant 0 : index
    %11 = vector.load %arg3[%c0_6, %c0_7] : memref<1x2xf32, #tpu.memory_space<vmem>>, vector<1x2xf32>
    %12 = arith.addf %10, %11 : vector<1x2xf32>
    %cst_8 = arith.constant 0.000000e+00 : f32
    %13 = vector.broadcast %cst_8 : f32 to vector<1x2xf32>
    %14 = arith.maximumf %12, %13 : vector<1x2xf32>
    %c0_9 = arith.constant 0 : index
    %c0_10 = arith.constant 0 : index
    %15 = vector.load %arg4[%c0_9, %c0_10] : memref<4x2xf32, #tpu.memory_space<vmem>>, vector<4x2xf32>
    %16 = vector.broadcast %14 : vector<1x2xf32> to vector<4x2xf32>
    %17 = arith.mulf %15, %16 : vector<4x2xf32>
    %cst_11 = arith.constant dense<0.000000e+00> : vector<4xf32>
    %18 = vector.multi_reduction <add>, %17, %cst_11 [1] : vector<4x2xf32> to vector<4xf32>
    %19 = vector.shape_cast %18 : vector<4xf32> to vector<4x1xf32>
    %c0_12 = arith.constant 0 : index
    %c0_13 = arith.constant 0 : index
    %20 = vector.load %arg5[%c0_12, %c0_13] : memref<4x1xf32, #tpu.memory_space<vmem>>, vector<4x1xf32>
    %21 = arith.addf %19, %20 : vector<4x1xf32>
    %22 = arith.negf %21 : vector<4x1xf32>
    %23 = math.exp %22 : vector<4x1xf32>
    %cst_14 = arith.constant 1.000000e+00 : f32
    %24 = vector.broadcast %cst_14 : f32 to vector<4x1xf32>
    %25 = arith.addf %24, %23 : vector<4x1xf32>
    %26 = arith.divf %24, %25 : vector<4x1xf32>
    %c0_15 = arith.constant 0 : index
    %27 = memref.load %arg7[%c0_15] : memref<1xf32, #tpu.memory_space<smem>>
    %28 = vector.broadcast %26 : vector<4x1xf32> to vector<4x256xf32>
    %29 = arith.mulf %1, %28 : vector<4x256xf32>
    %c0_16 = arith.constant 0 : index
    %c0_17 = arith.constant 0 : index
    %30 = vector.load %arg6[%c0_16, %c0_17] : memref<4x1xf32, #tpu.memory_space<vmem>>, vector<4x1xf32>
    %31 = vector.broadcast %30 : vector<4x1xf32> to vector<4x256xf32>
    %32 = arith.mulf %1, %31 : vector<4x256xf32>
    %cst_18 = arith.constant dense<0.000000e+00> : vector<256xf32>
    %33 = vector.multi_reduction <add>, %32, %cst_18 [0] : vector<4x256xf32> to vector<256xf32>
    %34 = vector.shape_cast %33 : vector<256xf32> to vector<1x256xf32>
    %35 = vector.broadcast %27 : f32 to vector<1x256xf32>
    %36 = arith.addf %34, %35 : vector<1x256xf32>
    %37 = arith.negf %36 : vector<1x256xf32>
    %38 = math.exp %37 : vector<1x256xf32>
    %cst_19 = arith.constant 1.000000e+00 : f32
    %39 = vector.broadcast %cst_19 : f32 to vector<1x256xf32>
    %40 = arith.addf %39, %38 : vector<1x256xf32>
    %41 = arith.divf %39, %40 : vector<1x256xf32>
    %42 = vector.broadcast %41 : vector<1x256xf32> to vector<4x256xf32>
    %43 = arith.mulf %1, %42 : vector<4x256xf32>
    %44 = arith.maximumf %29, %43 : vector<4x256xf32>
    %c0_20 = arith.constant 0 : index
    %c0_21 = arith.constant 0 : index
    %c0_22 = arith.constant 0 : index
    %45 = vector.load %arg8[%c0_20, %c0_21, %c0_22] : memref<1x4x256xf32, #tpu.memory_space<vmem>>, vector<1x4x256xf32>
    %46 = vector.shape_cast %45 : vector<1x4x256xf32> to vector<4x256xf32>
    %47 = vector.shape_cast %44 : vector<4x256xf32> to vector<1x4x256xf32>
    tpu.vector_store %arg8[%c0_20, %c0_21, %c0_22], %47 {strides = array<i32>} : memref<1x4x256xf32, #tpu.memory_space<vmem>>, vector<1x4x256xf32>,
    return
  }
  func.func @transform_0(%arg0: i32) -> (i32, i32, i32) {
    %c0_i32 = arith.constant 0 : i32
    %c0_i32_0 = arith.constant 0 : i32
    %c0_i32_1 = arith.constant 0 : i32
    return %arg0, %c0_i32, %c0_i32_0 : i32, i32, i32
  }
  func.func @transform_1(%arg0: i32) -> (i32, i32) {
    %c0_i32 = arith.constant 0 : i32
    %c0_i32_0 = arith.constant 0 : i32
    %c0_i32_1 = arith.constant 0 : i32
    return %c0_i32, %c0_i32_0 : i32, i32
  }
  func.func @transform_2(%arg0: i32) -> (i32, i32) {
    %c0_i32 = arith.constant 0 : i32
    %c0_i32_0 = arith.constant 0 : i32
    %c0_i32_1 = arith.constant 0 : i32
    return %c0_i32, %c0_i32_0 : i32, i32
  }
  func.func @transform_3(%arg0: i32) -> (i32, i32) {
    %c0_i32 = arith.constant 0 : i32
    %c0_i32_0 = arith.constant 0 : i32
    %c0_i32_1 = arith.constant 0 : i32
    return %c0_i32, %c0_i32_0 : i32, i32
  }
  func.func @transform_4(%arg0: i32) -> (i32, i32) {
    %c0_i32 = arith.constant 0 : i32
    %c0_i32_0 = arith.constant 0 : i32
    %c0_i32_1 = arith.constant 0 : i32
    return %c0_i32, %c0_i32_0 : i32, i32
  }
  func.func @transform_5(%arg0: i32) -> (i32, i32) {
    %c0_i32 = arith.constant 0 : i32
    %c0_i32_0 = arith.constant 0 : i32
    %c0_i32_1 = arith.constant 0 : i32
    return %c0_i32, %c0_i32_0 : i32, i32
  }
  func.func @transform_6(%arg0: i32) -> i32 {
    %c0_i32 = arith.constant 0 : i32
    %c0_i32_0 = arith.constant 0 : i32
    return %c0_i32 : i32
  }
  func.func @transform_7(%arg0: i32) -> (i32, i32, i32) {
    %c0_i32 = arith.constant 0 : i32
    %c0_i32_0 = arith.constant 0 : i32
    %c0_i32_1 = arith.constant 0 : i32
    return %arg0, %c0_i32, %c0_i32_0 : i32, i32, i32
  }
}

</mosaic_0001>

<bundles_post_ra>
// kernel: tpu_custom_call.1
= control target key start
LH: loop header
LB: loop body
LE: loop exit
PB: predicated region body
PF: predicated region fallthrough
CT: control target
= control target key end

     0   :  { %s757_s0 = inlined_call_operand.vmem [shape: f32[2,4,256], index: 0, kind: input, shape index: {}]   ;;  %s758_s1 = inlined_call_operand.vmem [shape: f32[4,2], index: 1, kind: input, shape index: {}]   ;;  %s759_s2 = inlined_call_operand.vmem [shape: f32[1,2], index: 2, kind: input, shape index: {}]   ;;  %s760_s3 = inlined_call_operand.vmem [shape: f32[4,2], index: 3, kind: input, shape index: {}]   ;;  %s761_s4 = inlined_call_operand.vmem [shape: f32[4,1], index: 4, kind: input, shape index: {}]   ;;  %s762_s5 = inlined_call_operand.vmem [shape: f32[4,1], index: 5, kind: input, shape index: {}]   ;;  %s763_s6 = inlined_call_operand.<no memory space> [shape: f32[1], index: 6, kind: input, shape index: {}]   ;;  %s764_s7 = inlined_call_operand.hbm [shape: f32[2,4,256], index: 7, kind: output, shape index: {}]  }
   0x1   :  { %12 = sst [smem:[#allocation2]] %s763_s6 }
   0x2   :  { %13 = vsyncpa [#allocation4], 0 }
   0x3   :  { %15 = vsyncpa [#allocation4 + $0x1], 0  ;;  %s641_s26 = smov 0   ;;  %s643_s27 = smov 0  }
   0x4   :  { %s645_s28 = smov 0   ;;  %s647_s29 = smov 0  }
   0x5 LB: > { %s662_s6 = sadd.s32 4294967295, %s593_s29   ;;  %s460_s30 = sadd.s32 4294967294, %s593_s29   ;;  %s593_s29 = sphi %s647_s29, %s770_s29   ;;  %s589_s28 = sphi %s645_s28, %s769_s28   ;;  %s585_s27 = sphi %s643_s27, %s768_s27   ;;  %s581_s26 = sphi %s641_s26, %s767_s26  }
   0x6   : > { %s666_s8 = sadd.s32 1, %s593_s29   ;;  %s180_s9 = sadd.s32 1, %s589_s28 }
   0x7   : > { %s177_s10 = ssub.s32 %s593_s29, %s666_s8  ;;  %p190_p0 = scmp.ne.s32.totalorder %s589_s28, %s585_s27 }
   0x8   : > { %p178_p1 = scmp.eq.s32.totalorder %s177_s10, 0  ;;  %p191_p2 = scmp.eq.s32.totalorder %s662_s6, 1 }
   0x9   : > { %p196_p3 = scmp.ne.s32.totalorder %s585_s27, %s581_s26  ;;  %p197_p4 = scmp.eq.s32.totalorder %s460_s30, 1 }
   0xa   : > { %s677_s11 = scalar_select %p178_p1, %s589_s28, %s180_s9  }
   0xb   : > { %p679_p5 = por %p191_p2, %p190_p0  ;;  %p683_p6 = por %p197_p4, %p196_p3 }
   0xc   : > { %p463_p7 = scmp.ge.s32.totalorder %s593_s29, 1  ;;  %p241_p8 = scmp.lt.s32.totalorder %s593_s29, 3 }
   0xe   : > { %p242_p9 = pnand %p463_p7, %p241_p8 }
   0xf   : > { %p273_p10 = scmp.lt.s32.totalorder (!%p242_p9), %s662_s6, 1  ;;  %s476_s17 = sshll.u32 (!%p242_p9), %s662_s6, 7 }
  0x10   : > { %245 = sbr.rel (%p242_p9) target bundleno = 510 (0x1fe), region = 48  ;;  %s399_s22 = scalar_lea.hbm (!%p242_p9), %s764_s7, %s476_s17 }
  0x15   : > { %s274_s14 = scalar_select %p273_p10, %s662_s6, 1  ;;  %vm282_vm0 = vcmask 1043456   ;;  %v333_v5 = vld [vmem:[%s762_s5] sm:$0xf]  ;;  %v595_v6 = vmov 0   ;;  %vm291_vm1 = vcmask 11264   ;;  %v303_v15 = vlaneseq }
  0x16   : > { %518 = vset.pattern.permute.xlu1 %v595_v6  ;;  %519 = vset.pattern.permute.xlu0 %v595_v6  ;;  %v289_v7 = vld [vmem:[%s758_s1] sm:$0xf]  ;;  %v596_v35 = vmov 839922192   ;;  %s597_s6 = smov [#allocation3]  }
  0x17   : > { %s475_s15 = sshll.u32 %s274_s14, 3  ;;  %336 = vperm.xlu1 %518, %v333_v5   ;;  %v304_v18 = vshrl.u32 %v303_v15, 7  ;;  %v299_v19 = vld [vmem:[%s759_s2] sm:$0x1]  ;;  %v325_v36 = vunpack.c.l.s4 %v596_v35  ;;  %s319_s14 = sld [smem:[#allocation2]] }
  0x18   : > { %s277_s18 = scalar_lea.vmem %s757_s0, %s475_s15  ;;  %v302_v24 = vld [vmem:[%s760_s3] sm:$0xf]  ;;  %s270_s15 = sand.u32 1, %s585_s27  }
  0x19   : > { %v694_v0 = vld [vmem:[%s277_s18] sm:$0xff]  ;;  %v305_v22 = vsub.s32 0, %v304_v18  ;;  %v326_v37 = vunpack.c.0.s8 %v325_v36  ;;  %s464_s16 = sshll.u32 %s270_s15, 3  ;;  %s387_s23 = scalar_lea.sflag [#allocation4], %s270_s15 }
  0x1a   : > { %v280_v1 = vcombine.high %v694_v0, %v694_v0  ;;  %v283_v2 = vsel %vm282_vm0, %v694_v0, 0.0  ;;  %v311_v28 = vld [vmem:[%s761_s4] sm:$0xf]  ;;  %s272_s18 = scalar_lea.vmem [#allocation3], %s464_s16  ;;  %s537_s25 = sshll.u32 %s597_s6, 4  ;;  %s538_s25 = int_to_ptr.vmem [resolvable:$false] %s537_s25 }
  0x1b   : > { %v329_v38 = vsub.s32 %v326_v37, %v304_v18  ;;  %s401_s19 = sshll.u32 %s272_s18, 4  ;;  %s539_s30 = scalar_lea.vmem %s538_s25, 256  ;;  %s402_s19 = int_to_ptr.vmem [resolvable:$true] %s401_s19 }
  0x1c   : > { %v284_v3 = vsel %vm282_vm0, %v280_v1, 0.0  ;;  %s533_s24 = scalar_lea.vmem %s402_s19, 128  ;;  %p540_p0 = scmp.lt.s32.totalorder %s402_s19, %s538_s25 }
  0x1d   : > { %v285_v4 = vadd.f32 %v284_v3, %v283_v2  ;;  %v364_v57 = vstv %s319_s14  ;;  %p534_p11 = scmp.ne.s32.totalorder %s402_s19, %s533_s24  ;;  %p541_p1 = scmp.lt.s32.totalorder %s539_s30, %s533_s24 }
  0x1f   : > { %286 = vadd.xlane.f32.xlu0 %v285_v4  ;;  %p535_p12 = pnand %p534_p11, %p679_p5  ;;  %p542_p2 = por %p541_p1, %p540_p0 }
  0x21   : > { %p536_p13 = pneg %p535_p12 }
  0x23   : > { %p543_p3 = pnand %p542_p2, %p536_p13 }
  0x92   : > { %v337_v39 = vpop.permute.xlu1 %336 }
  0x93   : > { %v344_v40 = vrot.slane %v337_v39, %v329_v38 }
  0x95   : > { %v346_v41 = vmul.f32 %v344_v40, %v694_v0 }
  0x97   : > { %v348_v42 = vcombine.high %v346_v41, %v346_v41  ;;  %v350_v43 = vsel %vm282_vm0, %v346_v41, 0.0 }
  0x98   : > { %v351_v45 = vrot.slane %v350_v43, 4 }
  0x99   : > { %v357_v44 = vsel %vm282_vm0, %v348_v42, 0.0 }
  0x9a   : > { %v358_v46 = vrot.slane %v357_v44, 4  ;;  %v352_v47 = vadd.f32 %v351_v45, %v350_v43 }
  0x9c   : > { %v359_v48 = vadd.f32 %v358_v46, %v357_v44  ;;  %v353_v49 = vrot.slane %v352_v47, 2 }
  0x9e   : > { %v360_v50 = vrot.slane %v359_v48, 2  ;;  %v354_v51 = vadd.f32 %v353_v49, %v352_v47 }
  0xa0   : > { %v361_v52 = vadd.f32 %v360_v50, %v359_v48  ;;  %v355_v53 = vrot.slane %v354_v51, 1 }
  0xa2   : > { %v362_v54 = vrot.slane %v361_v52, 1  ;;  %v356_v55 = vadd.f32 %v355_v53, %v354_v51 }
  0xa4   : > { %v363_v56 = vadd.f32 %v362_v54, %v361_v52  ;;  %v365_v58 = vadd.f32 %v364_v57, %v356_v55 }
  0xa6   : > { %v366_v59 = vadd.f32 %v364_v57, %v363_v56  ;;  %v468_v60 = vmul.f32 -1.442695, %v365_v58 }
  0xa8   : > { %v287_v8 = vpop.xlane.xlu0 %286  ;;  %v469_v61 = vmul.f32 -1.442695, %v366_v59 }
  0xa9   : > { %v288_v9 = vmul.f32 0.00390625, %v287_v8 }
  0xab   : > { %v290_v10 = vmul.f32 %v289_v7, %v288_v9 }
  0xad   : > { %v292_v11 = vsel %vm291_vm1, %v290_v10, 0.0 }
  0xae   : > { %v293_v12 = vrot.slane %v292_v11, 4 }
  0xb0   : > { %v294_v13 = vadd.f32 %v293_v12, %v292_v11 }
  0xb2   : > { %v295_v14 = vrot.slane %v294_v13, 2 }
  0xb4   : > { %v296_v16 = vadd.f32 %v295_v14, %v294_v13 }
  0xb6   : > { %v297_v17 = vrot.slane %v296_v16, 1 }
  0xb8   : > { %v298_v20 = vadd.f32 %v297_v17, %v296_v16 }
  0xba   : > { %v300_v21 = vadd.f32 %v299_v19, %v298_v20 }
  0xbc   : > { %v301_v23 = vmax.f32 %v300_v21, 0.0 }
  0xbe   : > { %v306_v25 = vrot.slane %v301_v23, %v305_v22 }
  0xc0   : > { %v307_v26 = vmul.f32 %v306_v25, %v302_v24 }
  0xc2   : > { %v308_v27 = vsel %vm291_vm1, %v307_v26, 0.0 }
  0xc3   : > { %309 = vadd.xlane.f32.xlu0 %v308_v27 }
 0x14c   : > { %v310_v29 = vpop.xlane.xlu0 %309 }
 0x14d   : > { %v312_v30 = vadd.f32 %v311_v28, %v310_v29 }
 0x14f   : > { %v467_v31 = vmul.f32 -1.442695, %v312_v30 }
 0x151   : > { %521 = vpow2.f32 %v467_v31 }
 0x15e   : > { %v522_v32 = vpop.eup %521 }
 0x15f   : > { %v316_v33 = vadd.f32 1.0, %v522_v32 }
 0x161   : > { %523 = vrcp.f32 %v316_v33 }
 0x162   : > { %525 = vpow2.f32 %v468_v60 }
 0x163   : > { %527 = vpow2.f32 %v469_v61 }
 0x16e   : > { %v524_v34 = vpop.eup %523 }
 0x16f   : > { %322 = vperm.xlu1 %518, %v524_v34   ;;  %v526_v62 = vpop.eup %525 }
 0x170   : > { %v528_v63 = vpop.eup %527  ;;  %v373_v1 = vadd.f32 1.0, %v526_v62 }
 0x171   : > { %v374_v2 = vadd.f32 1.0, %v528_v63 }
 0x172   : > { %529 = vrcp.f32 %v373_v1 }
 0x173   : > { %531 = vrcp.f32 %v374_v2 }
 0x17f   : > { %v530_v3 = vpop.eup %529 }
 0x180   : > { %v532_v4 = vpop.eup %531 }
 0x181   : > { %v381_v5 = vcombine.low %v530_v3, %v532_v4 }
 0x183   : > { %v383_v8 = vmul.f32 %v381_v5, %v694_v0 }
 0x1ea   : > { %v323_v6 = vpop.permute.xlu1 %322 }
 0x1eb   : > { %v330_v7 = vrot.slane %v323_v6, %v329_v38 }
 0x1ed   : > { %v332_v9 = vmul.f32 %v330_v7, %v694_v0 }
 0x1ef   : > { %v384_v10 = vmax.f32 %v332_v9, %v383_v8 }
 0x1f1   : > { %385 = vst [vmem:[%s272_s18] sm:$0xff] %v384_v10 }
 0x1f2   : > { %546 = shalt.err (!%p543_p3)
}
 0x1f3   : > { %s547_s9 = scalar_lea.hbm %s399_s22, 128  ;;  %s551_s15 = scalar_lea.hbm %s764_s7, 256 }
 0x1f4   : > { %p548_p4 = scmp.ne.s32.totalorder %s399_s22, %s547_s9  ;;  %p552_p9 = scmp.lt.s32.totalorder %s399_s22, %s764_s7 }
 0x1f5   : > { %p553_p10 = scmp.lt.s32.totalorder %s551_s15, %s547_s9 }
 0x1f6   : > { %p549_p7 = pnand %p548_p4, %p679_p5 }
 0x1f7   : > { %p554_p11 = por %p553_p10, %p552_p9 }
 0x1f8   : > { %p550_p8 = pneg %p549_p7 }
 0x1fa   : > { %p555_p12 = pnand %p554_p11, %p550_p8 }
 0x1fc   : > { %558 = shalt.err (!%p555_p12)
}
 0x1fd   : > { %477 = dma.vmem_to_hbm [thread:$0]  (%p679_p5), %s402_s19, 128, %s399_s22, %s387_s23  }
 0x1fe PF: > { %p483_p13 = scmp.ge.s32.totalorder %s593_s29, 2  ;;  %s413_s18 = sand.u32 1, %s581_s26  }
 0x1ff   : > { %s414_s20 = scalar_lea.sflag [#allocation4], %s413_s18 }
 0x200   : > { %p480_p0 = pnand %p483_p13, %p683_p6 }
 0x202   : > { %p481_p1 = pneg %p480_p0 }
 0x204   : > { %576 = dma.done.wait (%p481_p1), %s414_s20, 128  }
 0x205   : > { %578 = vsyncadd (%p481_p1), %s414_s20, 4294967168  ;;  %p18_p2 = scmp.ge.s32.totalorder %s666_s8, 4   ;;  %s767_s26 = smov %s585_s27 }
 0x206   : > { %s768_s27 = smov %s589_s28  ;;  %s769_s28 = smov %s677_s11 }
 0x207   : > { %s770_s29 = smov %s666_s8  ;;  %20 = sbr.rel (!%p18_p2) target bundleno = 5 (0x5), region = 83 }
 0x20c   :  { %419 = vsyncpa [#allocation4], 1 }
 0x20d   :  { %421 = vsyncpa [#allocation4 + $0x1], 1 }

</bundles_post_ra>
